<compile_context>
chip_gen: v6e
topology: v6e:2x2x1
jax: 0.10.0
libtpu: 0.0.40
codegen_flags: <defaults>
</compile_context>

<pallas_src>
import numpy as np
import jax
import jax.numpy as jnp
from jax import lax
from jax.experimental import pallas as pl
from jax.experimental.pallas import tpu as pltpu


def _hann_periodic(m):
    # scipy.signal.get_window('hann', m) (fftbins=True, i.e. periodic)
    n = np.arange(m, dtype=np.float64)
    return 0.5 - 0.5 * np.cos(2.0 * np.pi * n / m)


def _round_up(x, m):
    return (x + m - 1) // m * m


def _build_consts(win_len, fft_len, win_hop, win_sqrt, num_samples):
    """Replicates STFT.__init_kernel__ deterministically and precomputes the
    COLA normalization.  Returns lane-padded, fused forward/inverse matrices."""
    N, hop = fft_len, win_hop
    dim = N // 2 + 1
    dim_pad = _round_up(dim, 128)

    n = np.arange(N, dtype=np.float64)[:, None]
    k = np.arange(dim, dtype=np.float64)[None, :]
    ang = 2.0 * np.pi * n * k / N
    # torch.rfft(torch.eye(N), 1): row n -> exp(-2*pi*i*n*k/N)
    fft_kernel = np.concatenate([np.cos(ang), -np.sin(ang)], axis=1)   # [N, 2*dim]
    ifft_kernel = np.linalg.pinv(fft_kernel)                           # [2*dim, N]

    window = _hann_periodic(win_len)
    lp = (fft_len - win_len) // 2
    rp = lp + (fft_len - win_len) % 2
    window = np.pad(window, (lp, rp))                                  # 'continue' mode
    if win_sqrt:
        padded_window = window
        window = np.sqrt(window)
    else:
        padded_window = window ** 2

    fft_kT = fft_kernel * window[:, None]                              # [N, 2*dim]
    ifft_kw = ifft_kernel * window[None, :]                            # [2*dim, N]

    # Fused, lane-padded forward matrix  [N, 2*dim_pad] = [real cols | imag cols]
    w_fwd = np.zeros((N, 2 * dim_pad), np.float64)
    w_fwd[:, :dim] = fft_kT[:, :dim]
    w_fwd[:, dim_pad:dim_pad + dim] = fft_kT[:, dim:]
    # Fused, lane-padded inverse matrix  [2*dim_pad, N] = [real rows ; imag rows]
    w_inv = np.zeros((2 * dim_pad, N), np.float64)
    w_inv[:dim, :] = ifft_kw[:dim, :]
    w_inv[dim_pad:dim_pad + dim, :] = ifft_kw[dim:, :]

    # ---- COLA denominator (depends only on window/hop/T -> precompute) -------
    pad = N // 2
    Lp0 = num_samples + 2 * pad                 # reflect-padded length
    T = (Lp0 - N) // hop + 1                    # frames produced by strided conv1d
    C = -(-Lp0 // hop)                          # chunks of `hop` samples (ceil)
    L = C * hop
    coff = np.zeros(L, np.float64)
    for t in range(T):
        coff[t * hop: t * hop + N] += padded_window
    scale = np.ones(L, np.float64)
    region = slice(pad, pad + num_samples)
    c = coff[region]
    scale[region] = np.where(c > 1e-8, 1.0 / np.where(c > 1e-8, c, 1.0), 1.0)
    inv_coff = scale.reshape(C, hop)

    return (w_fwd.astype(np.float32), w_inv.astype(np.float32),
            inv_coff.astype(np.float32), dim_pad, T, C)


def _make_kernel(T, C, hop, S, dim_pad, compute_dtype):
    def kernel(x_ref, wfwd_ref, winv_ref, invc_ref, out_ref, ola_ref):
        chunks = x_ref[0]                                   # [C, hop]

        # ---- enframe folded into the fused windowed-DFT matmul ---------------
        # frames[t, s*hop:(s+1)*hop] == chunks[t+s]
        #   => spec = sum_s chunks[s:s+T] @ W_fwd[s*hop:(s+1)*hop]
        spec = None
        for s in range(S):
            part = jnp.dot(chunks[s:s + T, :].astype(compute_dtype),
                           wfwd_ref[s * hop:(s + 1) * hop, :],
                           preferred_element_type=jnp.float32)         # [T, 2*dim_pad]
            spec = part if spec is None else spec + part

        # ---- magphase -> realimag round trip ---------------------------------
        # cos(atan2(i, r)) = r/|z|, sin(atan2(i, r)) = i/|z| (atan2(0,0)=0 ->
        # cos=1, sin=0); composing with mag = |z| gives spec * (mag/|z|).
        real = spec[:, :dim_pad]
        imag = spec[:, dim_pad:]
        sq = real * real + imag * imag
        nz = sq > 0.0
        inv = lax.rsqrt(jnp.where(nz, sq, 1.0))             # 1/|z|
        factor = jnp.where(nz, (sq * inv) * inv, 1.0)       # mag/|z|
        spec2 = spec * jnp.concatenate([factor, factor], axis=-1)

        # ---- iSTFT: fused windowed-iDFT matmul --------------------------------
        rec = jnp.dot(spec2.astype(compute_dtype), winv_ref[...],
                      preferred_element_type=jnp.float32)              # [T, N]

        # ---- overlap-add, chunked: ola[s:s+T] += rec[:, s*hop:(s+1)*hop] ------
        ola_ref[...] = jnp.zeros_like(ola_ref)
        for s in range(S):
            ola_ref[s:s + T, :] = ola_ref[s:s + T, :] + rec[:, s * hop:(s + 1) * hop]

        # ---- COLA normalization (precomputed reciprocal) ----------------------
        # Faithful to the reference: `coff` has batch dim 1, so torch.where()
        # yields batch index 0 only and the division is applied to batch 0 only.
        b = pl.program_id(0)
        scale = jnp.where(b == 0, invc_ref[...], 1.0)
        out_ref[0] = ola_ref[...] * scale

    return kernel


def stft_forward(x, *, win_len=1024, win_hop=512, fft_len=1024, win_sqrt=False,
                 weight_dtype=jnp.float32):
    """Forward pass of the PyTorch STFT module (transform -> inverse).

    `weight_dtype` may be set to jnp.bfloat16 on v6e/v7x for MXU-native matmuls
    (f32 accumulation is kept); default float32 for reference-level accuracy."""
    assert fft_len >= win_len
    B, ns = x.shape
    N, hop = fft_len, win_hop
    pad = N // 2
    # TODO(synk): kernel assumes win_hop divides fft_len (true for the default
    # and demo configs); general hop would need element-granular framing.
    assert N % hop == 0, "kernel requires win_hop to divide fft_len"
    assert ns > pad, "reflect padding requires num_samples > fft_len // 2"
    S = N // hop

    w_fwd, w_inv, inv_coff, dim_pad, T, C = _build_consts(
        win_len, fft_len, hop, win_sqrt, ns)
    L = C * hop

    # glue: reflect pad (F.pad mode='reflect'), zero-pad to a whole number of
    # hop-chunks, and view as [B, C, hop] (free HBM reshape).
    xp = jnp.pad(x.astype(jnp.float32), ((0, 0), (pad, pad)), mode="reflect")
    Lp0 = ns + 2 * pad
    if L > Lp0:
        xp = jnp.pad(xp, ((0, 0), (0, L - Lp0)))
    x_chunks = xp.reshape(B, C, hop)

    compute_dtype = jnp.dtype(weight_dtype)
    kernel = _make_kernel(T, C, hop, S, dim_pad, compute_dtype)

    grid_spec = pltpu.PrefetchScalarGridSpec(
        num_scalar_prefetch=0,
        grid=(B,),
        in_specs=[
            pl.BlockSpec((1, C, hop), lambda b: (b, 0, 0)),        # audio chunks
            pl.BlockSpec((N, 2 * dim_pad), lambda b: (0, 0)),      # fused windowed DFT
            pl.BlockSpec((2 * dim_pad, N), lambda b: (0, 0)),      # fused windowed iDFT
            pl.BlockSpec((C, hop), lambda b: (0, 0)),              # precomputed 1/COLA
        ],
        out_specs=pl.BlockSpec((1, C, hop), lambda b: (b, 0, 0)),
        scratch_shapes=[pltpu.VMEM((C, hop), jnp.float32)],        # chunked OLA buffer
    )
    out = pl.pallas_call(
        kernel,
        out_shape=jax.ShapeDtypeStruct((B, C, hop), jnp.float32),
        grid_spec=grid_spec,
        compiler_params=pltpu.CompilerParams(
            dimension_semantics=("parallel",)),
    )(x_chunks,
      jnp.asarray(w_fwd, dtype=compute_dtype),
      jnp.asarray(w_inv, dtype=compute_dtype),
      jnp.asarray(inv_coff))

    # crop center (lane-dense store in the kernel; cheap reshape/slice here)
    return out.reshape(B, L)[:, pad: pad + ns]


if __name__ == "__main__":
    # Small, TPU-friendly config consistent with the module (fft_len >= win_len,
    # num_samples > pad_amount for valid reflect padding).
    B, num_samples = 2, 1024
    win_len = fft_len = 256
    win_hop = 128

    key = jax.random.PRNGKey(0)
    x = jax.random.normal(key, (B, num_samples), dtype=jnp.float32)

    y = stft_forward(x, win_len=win_len, win_hop=win_hop, fft_len=fft_len)
    y = jax.block_until_ready(y)
    assert y.shape == (B, num_samples) and y.dtype == jnp.float32
    assert bool(jnp.all(jnp.isfinite(y)))
    print("KERNEL_OK")
</pallas_src>

<mosaic_0001>
module attributes {stable_mosaic.version = 11 : i64} {
  func.func @kernel(%arg0: i32, %arg1: memref<1x10x128xf32, #tpu.memory_space<vmem>>, %arg2: memref<256x512xf32, #tpu.memory_space<vmem>>, %arg3: memref<512x256xf32, #tpu.memory_space<vmem>>, %arg4: memref<10x128xf32, #tpu.memory_space<vmem>>, %arg5: memref<1x10x128xf32, #tpu.memory_space<vmem>>, %arg6: memref<10x128xf32, #tpu.memory_space<vmem>>) attributes {dimension_semantics = [#tpu.dimension_semantics<parallel>], iteration_bounds = array<i64: 2>, scalar_prefetch = 0 : i64, scratch_operands = 1 : i64, tpu.core_type = #tpu.core_type<tc>, window_params = [{transform_indices = @transform_0, window_bounds = array<i64: 1, 10, 128>}, {pipeline_mode = #tpu.pipeline_mode<synchronous>, transform_indices = @transform_1, window_bounds = array<i64: 256, 512>}, {pipeline_mode = #tpu.pipeline_mode<synchronous>, transform_indices = @transform_2, window_bounds = array<i64: 512, 256>}, {pipeline_mode = #tpu.pipeline_mode<synchronous>, transform_indices = @transform_3, window_bounds = array<i64: 10, 128>}, {transform_indices = @transform_4, window_bounds = array<i64: 1, 10, 128>}]} {
    %c0 = arith.constant 0 : index
    %c0_0 = arith.constant 0 : index
    %c0_1 = arith.constant 0 : index
    %0 = vector.load %arg1[%c0, %c0_0, %c0_1] : memref<1x10x128xf32, #tpu.memory_space<vmem>>, vector<1x10x128xf32>
    %1 = vector.shape_cast %0 : vector<1x10x128xf32> to vector<10x128xf32>
    %2 = vector.extract_strided_slice %1 {offsets = [0, 0], sizes = [9, 128], strides = [1, 1]} : vector<10x128xf32> to vector<9x128xf32>
    %c0_2 = arith.constant 0 : index
    %c0_3 = arith.constant 0 : index
    %3 = vector.load %arg2[%c0_2, %c0_3] : memref<256x512xf32, #tpu.memory_space<vmem>>, vector<128x512xf32>
    %cst = arith.constant dense<0.000000e+00> : vector<9x512xf32>
    %4 = tpu.matmul %2, %3, %cst {dimension_numbers = #tpu.dot_dimension_numbers<[1], [0], [0], [1], [0, 0, 1, 1], [], []>} : vector<9x128xf32>, vector<128x512xf32>, vector<9x512xf32> -> vector<9x512xf32>
    %5 = vector.extract_strided_slice %1 {offsets = [1, 0], sizes = [9, 128], strides = [1, 1]} : vector<10x128xf32> to vector<9x128xf32>
    %c128 = arith.constant 128 : index
    %c0_4 = arith.constant 0 : index
    %6 = vector.load %arg2[%c128, %c0_4] : memref<256x512xf32, #tpu.memory_space<vmem>>, vector<128x512xf32>
    %cst_5 = arith.constant dense<0.000000e+00> : vector<9x512xf32>
    %7 = tpu.matmul %5, %6, %cst_5 {dimension_numbers = #tpu.dot_dimension_numbers<[1], [0], [0], [1], [0, 0, 1, 1], [], []>} : vector<9x128xf32>, vector<128x512xf32>, vector<9x512xf32> -> vector<9x512xf32>
    %8 = arith.addf %4, %7 : vector<9x512xf32>
    %9 = vector.extract_strided_slice %8 {offsets = [0, 0], sizes = [9, 256], strides = [1, 1]} : vector<9x512xf32> to vector<9x256xf32>
    %10 = vector.extract_strided_slice %8 {offsets = [0, 256], sizes = [9, 256], strides = [1, 1]} : vector<9x512xf32> to vector<9x256xf32>
    %11 = arith.mulf %9, %9 : vector<9x256xf32>
    %12 = arith.mulf %10, %10 : vector<9x256xf32>
    %13 = arith.addf %11, %12 : vector<9x256xf32>
    %cst_6 = arith.constant 0.000000e+00 : f32
    %14 = vector.broadcast %cst_6 : f32 to vector<9x256xf32>
    %15 = arith.cmpf ogt, %13, %14 : vector<9x256xf32>
    %cst_7 = arith.constant 1.000000e+00 : f32
    %16 = vector.broadcast %cst_7 : f32 to vector<9x256xf32>
    %17 = arith.select %15, %13, %16 : vector<9x256xi1>, vector<9x256xf32>
    %18 = math.rsqrt %17 : vector<9x256xf32>
    %19 = arith.mulf %13, %18 : vector<9x256xf32>
    %20 = arith.mulf %19, %18 : vector<9x256xf32>
    %cst_8 = arith.constant 1.000000e+00 : f32
    %21 = vector.broadcast %cst_8 : f32 to vector<9x256xf32>
    %22 = arith.select %15, %20, %21 : vector<9x256xi1>, vector<9x256xf32>
    %23 = tpu.concatenate %22, %22 in 1 : vector<9x256xf32>, vector<9x256xf32> -> vector<9x512xf32>
    %24 = arith.mulf %8, %23 : vector<9x512xf32>
    %c0_9 = arith.constant 0 : index
    %c0_10 = arith.constant 0 : index
    %25 = vector.load %arg3[%c0_9, %c0_10] : memref<512x256xf32, #tpu.memory_space<vmem>>, vector<512x256xf32>
    %cst_11 = arith.constant dense<0.000000e+00> : vector<9x256xf32>
    %26 = tpu.matmul %24, %25, %cst_11 {dimension_numbers = #tpu.dot_dimension_numbers<[1], [0], [0], [1], [0, 0, 1, 1], [], []>} : vector<9x512xf32>, vector<512x256xf32>, vector<9x256xf32> -> vector<9x256xf32>
    %cst_12 = arith.constant 0.000000e+00 : f32
    %27 = vector.broadcast %cst_12 : f32 to vector<10x128xf32>
    %c0_13 = arith.constant 0 : index
    %c0_14 = arith.constant 0 : index
    %28 = vector.load %arg6[%c0_13, %c0_14] : memref<10x128xf32, #tpu.memory_space<vmem>>, vector<10x128xf32>
    tpu.vector_store %arg6[%c0_13, %c0_14], %27 {strides = array<i32>} : memref<10x128xf32, #tpu.memory_space<vmem>>, vector<10x128xf32>,
    %c0_15 = arith.constant 0 : index
    %c0_16 = arith.constant 0 : index
    %29 = vector.load %arg6[%c0_15, %c0_16] : memref<10x128xf32, #tpu.memory_space<vmem>>, vector<9x128xf32>
    %30 = vector.extract_strided_slice %26 {offsets = [0, 0], sizes = [9, 128], strides = [1, 1]} : vector<9x256xf32> to vector<9x128xf32>
    %31 = arith.addf %29, %30 : vector<9x128xf32>
    %c0_17 = arith.constant 0 : index
    %c0_18 = arith.constant 0 : index
    %32 = vector.load %arg6[%c0_17, %c0_18] : memref<10x128xf32, #tpu.memory_space<vmem>>, vector<9x128xf32>
    tpu.vector_store %arg6[%c0_17, %c0_18], %31 {strides = array<i32>} : memref<10x128xf32, #tpu.memory_space<vmem>>, vector<9x128xf32>,
    %c1 = arith.constant 1 : index
    %c0_19 = arith.constant 0 : index
    %33 = vector.load %arg6[%c1, %c0_19] : memref<10x128xf32, #tpu.memory_space<vmem>>, vector<9x128xf32>
    %34 = vector.extract_strided_slice %26 {offsets = [0, 128], sizes = [9, 128], strides = [1, 1]} : vector<9x256xf32> to vector<9x128xf32>
    %35 = arith.addf %33, %34 : vector<9x128xf32>
    %c1_20 = arith.constant 1 : index
    %c0_21 = arith.constant 0 : index
    %36 = vector.load %arg6[%c1_20, %c0_21] : memref<10x128xf32, #tpu.memory_space<vmem>>, vector<9x128xf32>
    tpu.vector_store %arg6[%c1_20, %c0_21], %35 {strides = array<i32>} : memref<10x128xf32, #tpu.memory_space<vmem>>, vector<9x128xf32>,
    %c0_i32 = arith.constant 0 : i32
    %37 = arith.cmpi eq, %arg0, %c0_i32 : i32
    %c0_22 = arith.constant 0 : index
    %c0_23 = arith.constant 0 : index
    %38 = vector.load %arg4[%c0_22, %c0_23] : memref<10x128xf32, #tpu.memory_space<vmem>>, vector<10x128xf32>
    %cst_24 = arith.constant 1.000000e+00 : f32
    %39 = vector.broadcast %cst_24 : f32 to vector<10x128xf32>
    %40 = arith.select %37, %38, %39 : vector<10x128xf32>
    %c0_25 = arith.constant 0 : index
    %c0_26 = arith.constant 0 : index
    %41 = vector.load %arg6[%c0_25, %c0_26] : memref<10x128xf32, #tpu.memory_space<vmem>>, vector<10x128xf32>
    %42 = arith.mulf %41, %40 : vector<10x128xf32>
    %c0_27 = arith.constant 0 : index
    %c0_28 = arith.constant 0 : index
    %c0_29 = arith.constant 0 : index
    %43 = vector.load %arg5[%c0_27, %c0_28, %c0_29] : memref<1x10x128xf32, #tpu.memory_space<vmem>>, vector<1x10x128xf32>
    %44 = vector.shape_cast %43 : vector<1x10x128xf32> to vector<10x128xf32>
    %45 = vector.shape_cast %42 : vector<10x128xf32> to vector<1x10x128xf32>
    tpu.vector_store %arg5[%c0_27, %c0_28, %c0_29], %45 {strides = array<i32>} : memref<1x10x128xf32, #tpu.memory_space<vmem>>, vector<1x10x128xf32>,
    return
  }
  func.func @transform_0(%arg0: i32) -> (i32, i32, i32) {
    %c0_i32 = arith.constant 0 : i32
    %c0_i32_0 = arith.constant 0 : i32
    %c0_i32_1 = arith.constant 0 : i32
    return %arg0, %c0_i32, %c0_i32_0 : i32, i32, i32
  }
  func.func @transform_1(%arg0: i32) -> (i32, i32) {
    %c0_i32 = arith.constant 0 : i32
    %c0_i32_0 = arith.constant 0 : i32
    %c0_i32_1 = arith.constant 0 : i32
    return %c0_i32, %c0_i32_0 : i32, i32
  }
  func.func @transform_2(%arg0: i32) -> (i32, i32) {
    %c0_i32 = arith.constant 0 : i32
    %c0_i32_0 = arith.constant 0 : i32
    %c0_i32_1 = arith.constant 0 : i32
    return %c0_i32, %c0_i32_0 : i32, i32
  }
  func.func @transform_3(%arg0: i32) -> (i32, i32) {
    %c0_i32 = arith.constant 0 : i32
    %c0_i32_0 = arith.constant 0 : i32
    %c0_i32_1 = arith.constant 0 : i32
    return %c0_i32, %c0_i32_0 : i32, i32
  }
  func.func @transform_4(%arg0: i32) -> (i32, i32, i32) {
    %c0_i32 = arith.constant 0 : i32
    %c0_i32_0 = arith.constant 0 : i32
    %c0_i32_1 = arith.constant 0 : i32
    return %arg0, %c0_i32, %c0_i32_0 : i32, i32, i32
  }
}

</mosaic_0001>

<bundles_post_ra>
// kernel: tpu_custom_call.1
= control target key start
LH: loop header
LB: loop body
LE: loop exit
PB: predicated region body
PF: predicated region fallthrough
CT: control target
= control target key end

     0   :  { %9 = vsyncpa [#allocation4], 0  ;;  %s1375_s0 = inlined_call_operand.vmem [shape: f32[2,10,128], index: 0, kind: input, shape index: {}]   ;;  %s1376_s1 = inlined_call_operand.hbm [shape: f32[256,512], index: 1, kind: input, shape index: {}]   ;;  %s1377_s2 = inlined_call_operand.hbm [shape: f32[512,256], index: 2, kind: input, shape index: {}]   ;;  %s1378_s3 = inlined_call_operand.vmem [shape: f32[10,128], index: 3, kind: input, shape index: {}]   ;;  %s1379_s4 = inlined_call_operand.vmem [shape: f32[2,10,128], index: 4, kind: output, shape index: {}]  }
   0x1   :  { %10 = vsyncpa [#allocation6], 0  ;;  %s1264_s15 = smov 0  }
   0x2 LB: > { %s1232_s16 = smov [#allocation3]   ;;  %s1270_s18 = sadd.s32 4294967295, %s1230_s15   ;;  %s1230_s15 = sphi %s1264_s15, %s16_s15  }
   0x3   : > { %s148_s17 = sshll.u32 %s1232_s16, 4  ;;  %p1107_p0 = scmp.ge.s32.totalorder %s1230_s15, 1  ;;  %s149_s17 = int_to_ptr.vmem [resolvable:$true] %s148_s17 }
   0x4   : > { %p136_p1 = scmp.lt.s32.totalorder %s1230_s15, 3  ;;  %p1137_p3 = scmp.eq.s32.totalorder %s1270_s18, 0 }
   0x5   : > { %s1233_s20 = smov [#allocation5]   ;;  %s1175_s23 = scalar_lea.vmem %s149_s17, 16384 }
   0x6   : > { %p1274_p2 = pnand %p1107_p0, %p136_p1  ;;  %s161_s21 = sshll.u32 %s1233_s20, 4  ;;  %s162_s21 = int_to_ptr.vmem [resolvable:$true] %s161_s21 }
   0x7   : > { %p1176_p7 = scmp.ne.s32.totalorder %s149_s17, %s1175_s23  ;;  %p1183_p10 = scmp.lt.s32.totalorder %s149_s17, %s149_s17 }
   0x8   : > { %p1130_p4 = pneg %p1274_p2  ;;  %p1184_p11 = scmp.lt.s32.totalorder %s1175_s23, %s1175_s23 }
   0xa   : > { %p1283_p5 = pnand %p1137_p3, %p1130_p4  ;;  %p1185_p12 = por %p1184_p11, %p1183_p10 }
   0xc   : > { %p1166_p6 = pneg %p1283_p5 }
   0xe   : > { %p1178_p8 = pnand %p1176_p7, %p1166_p6 }
  0x10   : > { %p1179_p9 = pneg %p1178_p8 }
  0x12   : > { %p1186_p13 = pnand %p1185_p12, %p1179_p9 }
  0x14   : > { %1189 = shalt.err (!%p1186_p13)
}
  0x15   : > { %s1234_s24 = smov 512   ;;  %s1235_s25 = smov 32  }
  0x16   : > { %1133 = dma.hbm_to_vmem [thread:$0]  (!%p1283_p5), %s1376_s1, 16384, %s149_s17, [#allocation4], %s1234_s24, %s1234_s24, %s1235_s25  }
  0x17   : > { %s1201_s28 = scalar_lea.vmem %s162_s21, 16384  ;;  %p1209_p7 = scmp.lt.s32.totalorder %s162_s21, %s162_s21 }
  0x18   : > { %p1202_p0 = scmp.ne.s32.totalorder %s162_s21, %s1201_s28  ;;  %p1210_p8 = scmp.lt.s32.totalorder %s1201_s28, %s1201_s28 }
  0x1a   : > { %p1204_p1 = pnand %p1202_p0, %p1166_p6  ;;  %p1211_p10 = por %p1210_p8, %p1209_p7 }
  0x1c   : > { %p1205_p4 = pneg %p1204_p1 }
  0x1e   : > { %p1212_p9 = pnand %p1211_p10, %p1205_p4 }
  0x20   : > { %1215 = shalt.err (!%p1212_p9)
}
  0x21   : > { %s1236_s29 = smov 256   ;;  %s1237_s30 = smov 16  }
  0x22   : > { %1136 = dma.hbm_to_vmem [thread:$0]  (!%p1283_p5), %s1377_s2, 16384, %s162_s21, [#allocation6], %s1236_s29, %s1236_s29, %s1237_s30  }
  0x23   : > { %188 = sbr.rel (%p1274_p2) target bundleno = 561 (0x231), region = 36 }
  0x28   : > { %1221 = dma.done.wait (%p1137_p3), [#allocation4], 16384  }
  0x29   : > { %1223 = vsyncadd (%p1137_p3), [#allocation4], 4294950912 }
  0x2a   : > { %1225 = dma.done.wait (%p1137_p3), [#allocation6], 16384  }
  0x2b   : > { %1227 = vsyncadd (%p1137_p3), [#allocation6], 4294950912  ;;  %v1238_v0 = vmov 0.0   ;;  %v355_v1 = vld [vmem:[#allocation3 + $0x3e8] sm:$0xff]  ;;  %v357_v2 = vld [vmem:[#allocation3 + $0x3f8] sm:$0xff]  ;;  %p218_p2 = scmp.lt.s32.totalorder %s1270_s18, 1 }
  0x2c   : > { %430 = vmatprep.mubr.f32.mxu0 %v1238_v0  ;;  %1001 = vst [vmem:[#allocation2 + $0x8] sm:$0x3] %v1238_v0  ;;  %507 = vmatprep.mubr.f32.mxu1 %v1238_v0  ;;  %v354_v3 = vld [vmem:[#allocation3 + $0x3e0] sm:$0xff]  ;;  %v356_v4 = vld [vmem:[#allocation3 + $0x3f0] sm:$0xff]  ;;  %v351_v5 = vld [vmem:[#allocation3 + $0x3c8] sm:$0xff]  ;;  %vm360_vm0 = vcmask 1046528  }
  0x2d   : > { %366 = vmatprep.subr.mxu0 %v355_v1  ;;  %443 = vmatprep.subr.mxu1 %v357_v2  ;;  %v353_v6 = vld [vmem:[#allocation3 + $0x3d8] sm:$0xff]  ;;  %v350_v7 = vld [vmem:[#allocation3 + $0x3c0] sm:$0xff]  ;;  %v352_v8 = vld [vmem:[#allocation3 + $0x3d0] sm:$0xff]  ;;  %s1322_s7 = scalar_select %p218_p2, %s1270_s18, 1 }
  0x2e   : > { %367 = vmatpush1.msra.mxu0 %v354_v3  ;;  %444 = vmatpush1.msra.mxu1 %v356_v4  ;;  %v347_v9 = vld [vmem:[#allocation3 + $0x3a8] sm:$0xff]  ;;  %v349_v10 = vld [vmem:[#allocation3 + $0x3b8] sm:$0xff]  ;;  %v346_v11 = vld [vmem:[#allocation3 + $0x3a0] sm:$0xff]  ;;  %s1017_s12 = scalar_select %p1137_p3, 1, 0 }
  0x2f   : > { %368 = vmatprep.subr.mxu0 %v351_v5  ;;  %445 = vmatprep.subr.mxu1 %v353_v6  ;;  %v348_v12 = vld [vmem:[#allocation3 + $0x3b0] sm:$0xff]  ;;  %v343_v13 = vld [vmem:[#allocation3 + $0x388] sm:$0xff]  ;;  %v345_v14 = vld [vmem:[#allocation3 + $0x398] sm:$0xff]  ;;  %s1120_s8 = sshll.u32 %s1322_s7, 4 }
  0x30   : > { %369 = vmatpush1.msra.mxu0 %v350_v7  ;;  %446 = vmatpush1.msra.mxu1 %v352_v8  ;;  %v342_v15 = vld [vmem:[#allocation3 + $0x380] sm:$0xff]  ;;  %v344_v16 = vld [vmem:[#allocation3 + $0x390] sm:$0xff]  ;;  %v339_v17 = vld [vmem:[#allocation3 + $0x368] sm:$0xff]  ;;  %s222_s11 = scalar_lea.vmem %s1375_s0, %s1120_s8  ;;  %s227_s20 = scalar_lea.vmem %s1379_s4, %s1120_s8 }
  0x31   : > { %370 = vmatprep.subr.mxu0 %v347_v9  ;;  %447 = vmatprep.subr.mxu1 %v349_v10  ;;  %v341_v18 = vld [vmem:[#allocation3 + $0x378] sm:$0xff]  ;;  %v338_v19 = vld [vmem:[#allocation3 + $0x360] sm:$0xff]  ;;  %v340_v20 = vld [vmem:[#allocation3 + $0x370] sm:$0xff] }
  0x32   : > { %371 = vmatpush1.msra.mxu0 %v346_v11  ;;  %448 = vmatpush1.msra.mxu1 %v348_v12  ;;  %v335_v21 = vld [vmem:[#allocation3 + $0x348] sm:$0xff]  ;;  %v337_v22 = vld [vmem:[#allocation3 + $0x358] sm:$0xff]  ;;  %v334_v23 = vld [vmem:[#allocation3 + $0x340] sm:$0xff] }
  0x33   : > { %372 = vmatprep.subr.mxu0 %v343_v13  ;;  %449 = vmatprep.subr.mxu1 %v345_v14  ;;  %v336_v24 = vld [vmem:[#allocation3 + $0x350] sm:$0xff]  ;;  %v331_v25 = vld [vmem:[#allocation3 + $0x328] sm:$0xff]  ;;  %v333_v26 = vld [vmem:[#allocation3 + $0x338] sm:$0xff] }
  0x34   : > { %373 = vmatpush1.msra.mxu0 %v342_v15  ;;  %450 = vmatpush1.msra.mxu1 %v344_v16  ;;  %v330_v27 = vld [vmem:[#allocation3 + $0x320] sm:$0xff]  ;;  %v332_v28 = vld [vmem:[#allocation3 + $0x330] sm:$0xff]  ;;  %v327_v29 = vld [vmem:[#allocation3 + $0x308] sm:$0xff] }
  0x35   : > { %374 = vmatprep.subr.mxu0 %v339_v17  ;;  %451 = vmatprep.subr.mxu1 %v341_v18  ;;  %v329_v30 = vld [vmem:[#allocation3 + $0x318] sm:$0xff]  ;;  %v326_v31 = vld [vmem:[#allocation3 + $0x300] sm:$0xff]  ;;  %v328_v32 = vld [vmem:[#allocation3 + $0x310] sm:$0xff] }
  0x36   : > { %375 = vmatpush1.msra.mxu0 %v338_v19  ;;  %452 = vmatpush1.msra.mxu1 %v340_v20  ;;  %v323_v33 = vld [vmem:[#allocation3 + $0x2e8] sm:$0xff]  ;;  %v325_v34 = vld [vmem:[#allocation3 + $0x2f8] sm:$0xff]  ;;  %v322_v35 = vld [vmem:[#allocation3 + $0x2e0] sm:$0xff] }
  0x37   : > { %376 = vmatprep.subr.mxu0 %v335_v21  ;;  %453 = vmatprep.subr.mxu1 %v337_v22  ;;  %v324_v36 = vld [vmem:[#allocation3 + $0x2f0] sm:$0xff]  ;;  %v319_v37 = vld [vmem:[#allocation3 + $0x2c8] sm:$0xff]  ;;  %v321_v38 = vld [vmem:[#allocation3 + $0x2d8] sm:$0xff] }
  0x38   : > { %377 = vmatpush1.msra.mxu0 %v334_v23  ;;  %454 = vmatpush1.msra.mxu1 %v336_v24  ;;  %v318_v39 = vld [vmem:[#allocation3 + $0x2c0] sm:$0xff]  ;;  %v320_v40 = vld [vmem:[#allocation3 + $0x2d0] sm:$0xff]  ;;  %v315_v41 = vld [vmem:[#allocation3 + $0x2a8] sm:$0xff] }
  0x39   : > { %378 = vmatprep.subr.mxu0 %v331_v25  ;;  %455 = vmatprep.subr.mxu1 %v333_v26  ;;  %v317_v42 = vld [vmem:[#allocation3 + $0x2b8] sm:$0xff]  ;;  %v314_v43 = vld [vmem:[#allocation3 + $0x2a0] sm:$0xff]  ;;  %v316_v44 = vld [vmem:[#allocation3 + $0x2b0] sm:$0xff] }
  0x3a   : > { %379 = vmatpush1.msra.mxu0 %v330_v27  ;;  %456 = vmatpush1.msra.mxu1 %v332_v28  ;;  %v311_v45 = vld [vmem:[#allocation3 + $0x288] sm:$0xff]  ;;  %v313_v46 = vld [vmem:[#allocation3 + $0x298] sm:$0xff]  ;;  %v310_v47 = vld [vmem:[#allocation3 + $0x280] sm:$0xff] }
  0x3b   : > { %380 = vmatprep.subr.mxu0 %v327_v29  ;;  %457 = vmatprep.subr.mxu1 %v329_v30  ;;  %v312_v48 = vld [vmem:[#allocation3 + $0x290] sm:$0xff]  ;;  %v307_v49 = vld [vmem:[#allocation3 + $0x268] sm:$0xff]  ;;  %v309_v50 = vld [vmem:[#allocation3 + $0x278] sm:$0xff] }
  0x3c   : > { %381 = vmatpush1.msra.mxu0 %v326_v31  ;;  %458 = vmatpush1.msra.mxu1 %v328_v32  ;;  %v306_v51 = vld [vmem:[#allocation3 + $0x260] sm:$0xff]  ;;  %v308_v52 = vld [vmem:[#allocation3 + $0x270] sm:$0xff]  ;;  %v1332_v54 = vld [vmem:[%s222_s11 + $0x8] sm:$0x3] }
  0x3d   : > { %382 = vmatprep.subr.mxu0 %v323_v33  ;;  %459 = vmatprep.subr.mxu1 %v325_v34  ;;  %v1330_v53 = vld [vmem:[%s222_s11] sm:$0xff]  ;;  %v303_v55 = vld [vmem:[#allocation3 + $0x248] sm:$0xff]  ;;  %v305_v56 = vld [vmem:[#allocation3 + $0x258] sm:$0xff]  ;;  %v1336_v62 = vrot.slane %v1332_v54, 1 }
  0x3e   : > { %383 = vmatpush1.msra.mxu0 %v322_v35  ;;  %460 = vmatpush1.msra.mxu1 %v324_v36  ;;  %v302_v57 = vld [vmem:[#allocation3 + $0x240] sm:$0xff]  ;;  %v304_v58 = vld [vmem:[#allocation3 + $0x250] sm:$0xff]  ;;  %v299_v59 = vld [vmem:[#allocation3 + $0x228] sm:$0xff]  ;;  %v361_v61 = vrot.slane %v1330_v53, 1 }
  0x3f   : > { %384 = vmatprep.subr.mxu0 %v319_v37  ;;  %461 = vmatprep.subr.mxu1 %v321_v38  ;;  %v301_v60 = vld [vmem:[#allocation3 + $0x238] sm:$0xff]  ;;  %v298_v63 = vld [vmem:[#allocation3 + $0x220] sm:$0xff]  ;;  %v300_v1 = vld [vmem:[#allocation3 + $0x230] sm:$0xff] }
  0x40   : > { %385 = vmatpush1.msra.mxu0 %v318_v39  ;;  %462 = vmatpush1.msra.mxu1 %v320_v40  ;;  %v295_v2 = vld [vmem:[#allocation3 + $0x208] sm:$0xff]  ;;  %v297_v3 = vld [vmem:[#allocation3 + $0x218] sm:$0xff]  ;;  %v294_v4 = vld [vmem:[#allocation3 + $0x200] sm:$0xff]  ;;  %v363_v6 = vsel %vm360_vm0, %v361_v61, %v1336_v62 }
  0x41   : > { %386 = vmatprep.subr.mxu0 %v315_v41  ;;  %463 = vmatprep.subr.mxu1 %v317_v42  ;;  %v296_v5 = vld [vmem:[#allocation3 + $0x210] sm:$0xff]  ;;  %v291_v7 = vld [vmem:[#allocation3 + $0x1e8] sm:$0xff]  ;;  %v293_v8 = vld [vmem:[#allocation3 + $0x1f8] sm:$0xff] }
  0x42   : > { %387 = vmatpush1.msra.mxu0 %v314_v43  ;;  %464 = vmatpush1.msra.mxu1 %v316_v44  ;;  %v290_v9 = vld [vmem:[#allocation3 + $0x1e0] sm:$0xff]  ;;  %v292_v10 = vld [vmem:[#allocation3 + $0x1f0] sm:$0xff]  ;;  %v287_v11 = vld [vmem:[#allocation3 + $0x1c8] sm:$0xff] }
  0x43   : > { %388 = vmatprep.subr.mxu0 %v311_v45  ;;  %465 = vmatprep.subr.mxu1 %v313_v46  ;;  %v289_v12 = vld [vmem:[#allocation3 + $0x1d8] sm:$0xff]  ;;  %v286_v13 = vld [vmem:[#allocation3 + $0x1c0] sm:$0xff]  ;;  %v288_v14 = vld [vmem:[#allocation3 + $0x1d0] sm:$0xff] }
  0x44   : > { %389 = vmatpush1.msra.mxu0 %v310_v47  ;;  %466 = vmatpush1.msra.mxu1 %v312_v48  ;;  %v283_v15 = vld [vmem:[#allocation3 + $0x1a8] sm:$0xff]  ;;  %v285_v16 = vld [vmem:[#allocation3 + $0x1b8] sm:$0xff]  ;;  %v282_v17 = vld [vmem:[#allocation3 + $0x1a0] sm:$0xff] }
  0x45   : > { %390 = vmatprep.subr.mxu0 %v307_v49  ;;  %467 = vmatprep.subr.mxu1 %v309_v50  ;;  %v284_v18 = vld [vmem:[#allocation3 + $0x1b0] sm:$0xff]  ;;  %v279_v19 = vld [vmem:[#allocation3 + $0x188] sm:$0xff]  ;;  %v281_v20 = vld [vmem:[#allocation3 + $0x198] sm:$0xff] }
  0x46   : > { %391 = vmatpush1.msra.mxu0 %v306_v51  ;;  %468 = vmatpush1.msra.mxu1 %v308_v52  ;;  %v278_v21 = vld [vmem:[#allocation3 + $0x180] sm:$0xff]  ;;  %v280_v22 = vld [vmem:[#allocation3 + $0x190] sm:$0xff]  ;;  %v275_v23 = vld [vmem:[#allocation3 + $0x168] sm:$0xff] }
  0x47   : > { %392 = vmatprep.subr.mxu0 %v303_v55  ;;  %469 = vmatprep.subr.mxu1 %v305_v56  ;;  %v277_v24 = vld [vmem:[#allocation3 + $0x178] sm:$0xff]  ;;  %v274_v25 = vld [vmem:[#allocation3 + $0x160] sm:$0xff]  ;;  %v276_v26 = vld [vmem:[#allocation3 + $0x170] sm:$0xff] }
  0x48   : > { %393 = vmatpush1.msra.mxu0 %v302_v57  ;;  %470 = vmatpush1.msra.mxu1 %v304_v58  ;;  %v271_v27 = vld [vmem:[#allocation3 + $0x148] sm:$0xff]  ;;  %v273_v28 = vld [vmem:[#allocation3 + $0x158] sm:$0xff]  ;;  %v270_v29 = vld [vmem:[#allocation3 + $0x140] sm:$0xff] }
  0x49   : > { %394 = vmatprep.subr.mxu0 %v299_v59  ;;  %471 = vmatprep.subr.mxu1 %v301_v60  ;;  %v272_v30 = vld [vmem:[#allocation3 + $0x150] sm:$0xff]  ;;  %v267_v31 = vld [vmem:[#allocation3 + $0x128] sm:$0xff]  ;;  %v269_v32 = vld [vmem:[#allocation3 + $0x138] sm:$0xff] }
  0x4a   : > { %395 = vmatpush1.msra.mxu0 %v298_v63  ;;  %472 = vmatpush1.msra.mxu1 %v300_v1  ;;  %v266_v33 = vld [vmem:[#allocation3 + $0x120] sm:$0xff]  ;;  %v268_v34 = vld [vmem:[#allocation3 + $0x130] sm:$0xff]  ;;  %v263_v35 = vld [vmem:[#allocation3 + $0x108] sm:$0xff] }
  0x4b   : > { %396 = vmatprep.subr.mxu0 %v295_v2  ;;  %473 = vmatprep.subr.mxu1 %v297_v3  ;;  %v265_v36 = vld [vmem:[#allocation3 + $0x118] sm:$0xff]  ;;  %v262_v37 = vld [vmem:[#allocation3 + $0x100] sm:$0xff]  ;;  %v264_v38 = vld [vmem:[#allocation3 + $0x110] sm:$0xff] }
  0x4c   : > { %397 = vmatpush1.msra.mxu0 %v294_v4  ;;  %474 = vmatpush1.msra.mxu1 %v296_v5  ;;  %v259_v39 = vld [vmem:[#allocation3 + $0xe8] sm:$0xff]  ;;  %v261_v40 = vld [vmem:[#allocation3 + $0xf8] sm:$0xff]  ;;  %v258_v41 = vld [vmem:[#allocation3 + $0xe0] sm:$0xff] }
  0x4d   : > { %431 = vmatmul.mubr.f32.vlgmr.msra.gmra.mxu0 %v363_v6  ;;  %508 = vmatmul.mubr.f32.vlgmr.msra.gmra.mxu1 %v363_v6  ;;  %v260_v42 = vld [vmem:[#allocation3 + $0xf0] sm:$0xff]  ;;  %v255_v43 = vld [vmem:[#allocation3 + $0xc8] sm:$0xff]  ;;  %v257_v44 = vld [vmem:[#allocation3 + $0xd8] sm:$0xff] }
  0x4e   : > { %520 = vmatprep.subr.mxu0 %v291_v7  ;;  %597 = vmatprep.subr.mxu1 %v293_v8  ;;  %v254_v45 = vld [vmem:[#allocation3 + $0xc0] sm:$0xff]  ;;  %v256_v46 = vld [vmem:[#allocation3 + $0xd0] sm:$0xff]  ;;  %v251_v47 = vld [vmem:[#allocation3 + $0xa8] sm:$0xff] }
  0x4f   : > { %521 = vmatpush1.msra.mxu0 %v290_v9  ;;  %598 = vmatpush1.msra.mxu1 %v292_v10  ;;  %v253_v48 = vld [vmem:[#allocation3 + $0xb8] sm:$0xff]  ;;  %v250_v49 = vld [vmem:[#allocation3 + $0xa0] sm:$0xff]  ;;  %v252_v50 = vld [vmem:[#allocation3 + $0xb0] sm:$0xff] }
  0x50   : > { %522 = vmatprep.subr.mxu0 %v287_v11  ;;  %599 = vmatprep.subr.mxu1 %v289_v12  ;;  %v247_v51 = vld [vmem:[#allocation3 + $0x88] sm:$0xff]  ;;  %v249_v52 = vld [vmem:[#allocation3 + $0x98] sm:$0xff]  ;;  %v246_v55 = vld [vmem:[#allocation3 + $0x80] sm:$0xff] }
  0x51   : > { %523 = vmatpush1.msra.mxu0 %v286_v13  ;;  %600 = vmatpush1.msra.mxu1 %v288_v14  ;;  %v248_v56 = vld [vmem:[#allocation3 + $0x90] sm:$0xff]  ;;  %v243_v57 = vld [vmem:[#allocation3 + $0x68] sm:$0xff]  ;;  %v245_v58 = vld [vmem:[#allocation3 + $0x78] sm:$0xff] }
  0x52   : > { %524 = vmatprep.subr.mxu0 %v283_v15  ;;  %601 = vmatprep.subr.mxu1 %v285_v16  ;;  %v242_v59 = vld [vmem:[#allocation3 + $0x60] sm:$0xff]  ;;  %v244_v60 = vld [vmem:[#allocation3 + $0x70] sm:$0xff]  ;;  %v239_v61 = vld [vmem:[#allocation3 + $0x48] sm:$0xff] }
  0x53   : > { %525 = vmatpush1.msra.mxu0 %v282_v17  ;;  %602 = vmatpush1.msra.mxu1 %v284_v18  ;;  %v241_v63 = vld [vmem:[#allocation3 + $0x58] sm:$0xff]  ;;  %v238_v1 = vld [vmem:[#allocation3 + $0x40] sm:$0xff]  ;;  %v240_v2 = vld [vmem:[#allocation3 + $0x50] sm:$0xff] }
  0x54   : > { %526 = vmatprep.subr.mxu0 %v279_v19  ;;  %603 = vmatprep.subr.mxu1 %v281_v20  ;;  %v235_v3 = vld [vmem:[#allocation3 + $0x28] sm:$0xff]  ;;  %v237_v4 = vld [vmem:[#allocation3 + $0x38] sm:$0xff]  ;;  %v234_v5 = vld [vmem:[#allocation3 + $0x20] sm:$0xff] }
  0x55   : > { %527 = vmatpush1.msra.mxu0 %v278_v21  ;;  %604 = vmatpush1.msra.mxu1 %v280_v22  ;;  %v236_v6 = vld [vmem:[#allocation3 + $0x30] sm:$0xff]  ;;  %v231_v7 = vld [vmem:[#allocation3 + $0x8] sm:$0xff]  ;;  %v233_v8 = vld [vmem:[#allocation3 + $0x18] sm:$0xff] }
  0x56   : > { %528 = vmatprep.subr.mxu0 %v275_v23  ;;  %605 = vmatprep.subr.mxu1 %v277_v24  ;;  %v230_v9 = vld [vmem:[#allocation3] sm:$0xff]  ;;  %v232_v10 = vld [vmem:[#allocation3 + $0x10] sm:$0xff]  ;;  %v813_v11 = vld [vmem:[#allocation5 + $0x2f8] sm:$0xff] }
  0x57   : > { %529 = vmatpush1.msra.mxu0 %v274_v25  ;;  %606 = vmatpush1.msra.mxu1 %v276_v26  ;;  %v748_v12 = vld [vmem:[#allocation5 + $0xf0] sm:$0xff]  ;;  %v747_v14 = vld [vmem:[#allocation5 + $0xe8] sm:$0xff]  ;;  %v746_v16 = vld [vmem:[#allocation5 + $0xe0] sm:$0xff] }
  0x58   : > { %530 = vmatprep.subr.mxu0 %v271_v27  ;;  %607 = vmatprep.subr.mxu1 %v273_v28  ;;  %v812_v13 = vld [vmem:[#allocation5 + $0x2f0] sm:$0xff]  ;;  %v811_v15 = vld [vmem:[#allocation5 + $0x2e8] sm:$0xff]  ;;  %v745_v17 = vld [vmem:[#allocation5 + $0xd8] sm:$0xff] }
  0x59   : > { %531 = vmatpush1.msra.mxu0 %v270_v29  ;;  %608 = vmatpush1.msra.mxu1 %v272_v30  ;;  %v744_v18 = vld [vmem:[#allocation5 + $0xd0] sm:$0xff]  ;;  %v743_v19 = vld [vmem:[#allocation5 + $0xc8] sm:$0xff]  ;;  %v742_v21 = vld [vmem:[#allocation5 + $0xc0] sm:$0xff] }
  0x5a   : > { %532 = vmatprep.subr.mxu0 %v267_v31  ;;  %609 = vmatprep.subr.mxu1 %v269_v32  ;;  %v807_v20 = vld [vmem:[#allocation5 + $0x2c8] sm:$0xff]  ;;  %v806_v22 = vld [vmem:[#allocation5 + $0x2c0] sm:$0xff]  ;;  %v741_v23 = vld [vmem:[#allocation5 + $0xb8] sm:$0xff] }
  0x5b   : > { %533 = vmatpush1.msra.mxu0 %v266_v33  ;;  %610 = vmatpush1.msra.mxu1 %v268_v34  ;;  %v805_v24 = vld [vmem:[#allocation5 + $0x2b8] sm:$0xff]  ;;  %v740_v25 = vld [vmem:[#allocation5 + $0xb0] sm:$0xff]  ;;  %v739_v27 = vld [vmem:[#allocation5 + $0xa8] sm:$0xff] }
  0x5c   : > { %534 = vmatprep.subr.mxu0 %v263_v35  ;;  %611 = vmatprep.subr.mxu1 %v265_v36  ;;  %v804_v26 = vld [vmem:[#allocation5 + $0x2b0] sm:$0xff]  ;;  %v803_v28 = vld [vmem:[#allocation5 + $0x2a8] sm:$0xff]  ;;  %v738_v29 = vld [vmem:[#allocation5 + $0xa0] sm:$0xff] }
  0x5d   : > { %535 = vmatpush1.msra.mxu0 %v262_v37  ;;  %612 = vmatpush1.msra.mxu1 %v264_v38  ;;  %v802_v30 = vld [vmem:[#allocation5 + $0x2a0] sm:$0xff]  ;;  %v737_v31 = vld [vmem:[#allocation5 + $0x98] sm:$0xff]  ;;  %v736_v33 = vld [vmem:[#allocation5 + $0x90] sm:$0xff] }
  0x5e   : > { %536 = vmatprep.subr.mxu0 %v259_v39  ;;  %613 = vmatprep.subr.mxu1 %v261_v40  ;;  %v801_v32 = vld [vmem:[#allocation5 + $0x298] sm:$0xff]  ;;  %v800_v34 = vld [vmem:[#allocation5 + $0x290] sm:$0xff]  ;;  %v735_v35 = vld [vmem:[#allocation5 + $0x88] sm:$0xff] }
  0x5f   : > { %537 = vmatpush1.msra.mxu0 %v258_v41  ;;  %614 = vmatpush1.msra.mxu1 %v260_v42  ;;  %v799_v36 = vld [vmem:[#allocation5 + $0x288] sm:$0xff]  ;;  %v734_v37 = vld [vmem:[#allocation5 + $0x80] sm:$0xff]  ;;  %v733_v39 = vld [vmem:[#allocation5 + $0x78] sm:$0xff] }
  0x60   : > { %538 = vmatprep.subr.mxu0 %v255_v43  ;;  %615 = vmatprep.subr.mxu1 %v257_v44  ;;  %v798_v38 = vld [vmem:[#allocation5 + $0x280] sm:$0xff]  ;;  %v797_v40 = vld [vmem:[#allocation5 + $0x278] sm:$0xff]  ;;  %v732_v41 = vld [vmem:[#allocation5 + $0x70] sm:$0xff] }
  0x61   : > { %539 = vmatpush1.msra.mxu0 %v254_v45  ;;  %616 = vmatpush1.msra.mxu1 %v256_v46  ;;  %v796_v42 = vld [vmem:[#allocation5 + $0x270] sm:$0xff]  ;;  %v731_v43 = vld [vmem:[#allocation5 + $0x68] sm:$0xff]  ;;  %v730_v45 = vld [vmem:[#allocation5 + $0x60] sm:$0xff] }
  0x62   : > { %540 = vmatprep.subr.mxu0 %v251_v47  ;;  %617 = vmatprep.subr.mxu1 %v253_v48  ;;  %v795_v44 = vld [vmem:[#allocation5 + $0x268] sm:$0xff]  ;;  %v794_v46 = vld [vmem:[#allocation5 + $0x260] sm:$0xff]  ;;  %v729_v47 = vld [vmem:[#allocation5 + $0x58] sm:$0xff] }
  0x63   : > { %541 = vmatpush1.msra.mxu0 %v250_v49  ;;  %618 = vmatpush1.msra.mxu1 %v252_v50  ;;  %v793_v48 = vld [vmem:[#allocation5 + $0x258] sm:$0xff]  ;;  %v728_v49 = vld [vmem:[#allocation5 + $0x50] sm:$0xff] }
  0x64   : > { %542 = vmatprep.subr.mxu0 %v247_v51  ;;  %619 = vmatprep.subr.mxu1 %v249_v52  ;;  %v792_v50 = vld [vmem:[#allocation5 + $0x250] sm:$0xff]  ;;  %v727_v51 = vld [vmem:[#allocation5 + $0x48] sm:$0xff] }
  0x65   : > { %543 = vmatpush1.msra.mxu0 %v246_v55  ;;  %620 = vmatpush1.msra.mxu1 %v248_v56  ;;  %v791_v52 = vld [vmem:[#allocation5 + $0x248] sm:$0xff]  ;;  %v726_v55 = vld [vmem:[#allocation5 + $0x40] sm:$0xff] }
  0x66   : > { %544 = vmatprep.subr.mxu0 %v243_v57  ;;  %621 = vmatprep.subr.mxu1 %v245_v58  ;;  %v790_v56 = vld [vmem:[#allocation5 + $0x240] sm:$0xff]  ;;  %v725_v57 = vld [vmem:[#allocation5 + $0x38] sm:$0xff] }
  0x67   : > { %436 = vmatprep.mubr.f32.mxu0 %v1238_v0  ;;  %513 = vmatprep.mubr.f32.mxu1 %v1238_v0  ;;  %v789_v58 = vld [vmem:[#allocation5 + $0x238] sm:$0xff] }
  0x68   : > { %545 = vmatpush1.msra.mxu0 %v242_v59  ;;  %622 = vmatpush1.msra.mxu1 %v244_v60  ;;  %v724_v59 = vld [vmem:[#allocation5 + $0x30] sm:$0xff] }
  0x69   : > { %437 = vmatmul.mubr.f32.gmra.mxu0 %v1336_v62  ;;  %514 = vmatmul.mubr.f32.gmra.mxu1 %v1336_v62  ;;  %v749_v62 = vld [vmem:[#allocation5 + $0xf8] sm:$0xff]  ;;  %v788_v60 = vld [vmem:[#allocation5 + $0x230] sm:$0xff] }
  0x6a   : > { %546 = vmatprep.subr.mxu0 %v239_v61  ;;  %623 = vmatprep.subr.mxu1 %v241_v63  ;;  %v723_v61 = vld [vmem:[#allocation5 + $0x28] sm:$0xff] }
  0x6b   : > { %547 = vmatpush1.msra.mxu0 %v238_v1  ;;  %624 = vmatpush1.msra.mxu1 %v240_v2  ;;  %v787_v63 = vld [vmem:[#allocation5 + $0x228] sm:$0xff]  ;;  %v722_v1 = vld [vmem:[#allocation5 + $0x20] sm:$0xff] }
  0x6c   : > { %548 = vmatprep.subr.mxu0 %v235_v3  ;;  %625 = vmatprep.subr.mxu1 %v237_v4  ;;  %v786_v2 = vld [vmem:[#allocation5 + $0x220] sm:$0xff]  ;;  %v721_v3 = vld [vmem:[#allocation5 + $0x18] sm:$0xff] }
  0x6d   : > { %549 = vmatpush1.msra.mxu0 %v234_v5  ;;  %626 = vmatpush1.msra.mxu1 %v236_v6  ;;  %v785_v4 = vld [vmem:[#allocation5 + $0x218] sm:$0xff]  ;;  %v720_v5 = vld [vmem:[#allocation5 + $0x10] sm:$0xff] }
  0x6e   : > { %550 = vmatprep.subr.mxu0 %v231_v7  ;;  %627 = vmatprep.subr.mxu1 %v233_v8  ;;  %v784_v6 = vld [vmem:[#allocation5 + $0x210] sm:$0xff]  ;;  %v719_v7 = vld [vmem:[#allocation5 + $0x8] sm:$0xff] }
  0x6f   : > { %551 = vmatpush1.msra.mxu0 %v230_v9  ;;  %584 = vmatprep.mubr.f32.mxu0 %v1238_v0  ;;  %v783_v8 = vld [vmem:[#allocation5 + $0x208] sm:$0xff]  ;;  %v718_v9 = vld [vmem:[#allocation5] sm:$0xff] }
  0x70   : > { %628 = vmatpush1.msra.mxu1 %v232_v10  ;;  %661 = vmatprep.mubr.f32.mxu1 %v1238_v0  ;;  %v782_v10 = vld [vmem:[#allocation5 + $0x200] sm:$0xff] }
  0x71   : > { %585 = vmatmul.mubr.f32.vlgmr.msra.gmra.mxu0 %v1330_v53  ;;  %662 = vmatmul.mubr.f32.vlgmr.msra.gmra.mxu1 %v1330_v53  ;;  %v810_v53 = vld [vmem:[#allocation5 + $0x2e0] sm:$0xff] }
  0x72   : > { %590 = vmatprep.mubr.f32.mxu0 %v1238_v0  ;;  %667 = vmatprep.mubr.f32.mxu1 %v1238_v0  ;;  %v809_v0 = vld [vmem:[#allocation5 + $0x2d8] sm:$0xff] }
  0x73   : > { %846 = vmatprep.subr.mxu0 %v749_v62  ;;  %923 = vmatprep.subr.mxu1 %v813_v11  ;;  %v781_v62 = vld [vmem:[#allocation5 + $0x1f8] sm:$0xff] }
  0x74   : > { %847 = vmatpush1.msra.mxu0 %v748_v12  ;;  %924 = vmatpush1.msra.mxu1 %v812_v13  ;;  %v845_v11 = vld [vmem:[#allocation5 + $0x3f8] sm:$0xff]  ;;  %v780_v12 = vld [vmem:[#allocation5 + $0x1f0] sm:$0xff] }
  0x75   : > { %591 = vmatmul.mubr.f32.gmra.mxu0 %v1332_v54  ;;  %668 = vmatmul.mubr.f32.gmra.mxu1 %v1332_v54  ;;  %v808_v54 = vld [vmem:[#allocation5 + $0x2d0] sm:$0xff] }
  0x76   : > { %848 = vmatprep.subr.mxu0 %v747_v14  ;;  %925 = vmatprep.subr.mxu1 %v811_v15  ;;  %v844_v13 = vld [vmem:[#allocation5 + $0x3f0] sm:$0xff]  ;;  %v779_v14 = vld [vmem:[#allocation5 + $0x1e8] sm:$0xff] }
  0x77   : > { %849 = vmatpush1.msra.mxu0 %v746_v16  ;;  %926 = vmatpush1.msra.mxu1 %v810_v53  ;;  %v843_v15 = vld [vmem:[#allocation5 + $0x3e8] sm:$0xff]  ;;  %v778_v16 = vld [vmem:[#allocation5 + $0x1e0] sm:$0xff] }
  0x78   : > { %850 = vmatprep.subr.mxu0 %v745_v17  ;;  %927 = vmatprep.subr.mxu1 %v809_v0  ;;  %v842_v53 = vld [vmem:[#allocation5 + $0x3e0] sm:$0xff]  ;;  %v777_v17 = vld [vmem:[#allocation5 + $0x1d8] sm:$0xff] }
  0x79   : > { %851 = vmatpush1.msra.mxu0 %v744_v18  ;;  %928 = vmatpush1.msra.mxu1 %v808_v54  ;;  %v841_v0 = vld [vmem:[#allocation5 + $0x3d8] sm:$0xff]  ;;  %v776_v18 = vld [vmem:[#allocation5 + $0x1d0] sm:$0xff] }
  0x7a   : > { %852 = vmatprep.subr.mxu0 %v743_v19  ;;  %929 = vmatprep.subr.mxu1 %v807_v20  ;;  %v840_v54 = vld [vmem:[#allocation5 + $0x3d0] sm:$0xff]  ;;  %v775_v19 = vld [vmem:[#allocation5 + $0x1c8] sm:$0xff] }
  0x7b   : > { %853 = vmatpush1.msra.mxu0 %v742_v21  ;;  %930 = vmatpush1.msra.mxu1 %v806_v22  ;;  %v839_v20 = vld [vmem:[#allocation5 + $0x3c8] sm:$0xff]  ;;  %v774_v21 = vld [vmem:[#allocation5 + $0x1c0] sm:$0xff] }
  0x7c   : > { %854 = vmatprep.subr.mxu0 %v741_v23  ;;  %931 = vmatprep.subr.mxu1 %v805_v24  ;;  %v838_v22 = vld [vmem:[#allocation5 + $0x3c0] sm:$0xff]  ;;  %v773_v23 = vld [vmem:[#allocation5 + $0x1b8] sm:$0xff] }
  0x7d   : > { %855 = vmatpush1.msra.mxu0 %v740_v25  ;;  %932 = vmatpush1.msra.mxu1 %v804_v26  ;;  %v837_v24 = vld [vmem:[#allocation5 + $0x3b8] sm:$0xff]  ;;  %v772_v25 = vld [vmem:[#allocation5 + $0x1b0] sm:$0xff] }
  0x7e   : > { %856 = vmatprep.subr.mxu0 %v739_v27  ;;  %933 = vmatprep.subr.mxu1 %v803_v28  ;;  %v836_v26 = vld [vmem:[#allocation5 + $0x3b0] sm:$0xff]  ;;  %v771_v27 = vld [vmem:[#allocation5 + $0x1a8] sm:$0xff] }
  0x7f   : > { %857 = vmatpush1.msra.mxu0 %v738_v29  ;;  %934 = vmatpush1.msra.mxu1 %v802_v30  ;;  %v835_v28 = vld [vmem:[#allocation5 + $0x3a8] sm:$0xff]  ;;  %v770_v29 = vld [vmem:[#allocation5 + $0x1a0] sm:$0xff] }
  0x80   : > { %858 = vmatprep.subr.mxu0 %v737_v31  ;;  %935 = vmatprep.subr.mxu1 %v801_v32  ;;  %v834_v30 = vld [vmem:[#allocation5 + $0x3a0] sm:$0xff]  ;;  %v769_v31 = vld [vmem:[#allocation5 + $0x198] sm:$0xff] }
  0x81   : > { %859 = vmatpush1.msra.mxu0 %v736_v33  ;;  %936 = vmatpush1.msra.mxu1 %v800_v34  ;;  %v833_v32 = vld [vmem:[#allocation5 + $0x398] sm:$0xff]  ;;  %v768_v33 = vld [vmem:[#allocation5 + $0x190] sm:$0xff] }
  0x82   : > { %860 = vmatprep.subr.mxu0 %v735_v35  ;;  %937 = vmatprep.subr.mxu1 %v799_v36  ;;  %v832_v34 = vld [vmem:[#allocation5 + $0x390] sm:$0xff]  ;;  %v767_v35 = vld [vmem:[#allocation5 + $0x188] sm:$0xff] }
  0x83   : > { %861 = vmatpush1.msra.mxu0 %v734_v37  ;;  %938 = vmatpush1.msra.mxu1 %v798_v38  ;;  %v831_v36 = vld [vmem:[#allocation5 + $0x388] sm:$0xff]  ;;  %v766_v37 = vld [vmem:[#allocation5 + $0x180] sm:$0xff] }
  0x84   : > { %862 = vmatprep.subr.mxu0 %v733_v39  ;;  %939 = vmatprep.subr.mxu1 %v797_v40  ;;  %v830_v38 = vld [vmem:[#allocation5 + $0x380] sm:$0xff]  ;;  %v765_v39 = vld [vmem:[#allocation5 + $0x178] sm:$0xff] }
  0x85   : > { %863 = vmatpush1.msra.mxu0 %v732_v41  ;;  %940 = vmatpush1.msra.mxu1 %v796_v42  ;;  %v829_v40 = vld [vmem:[#allocation5 + $0x378] sm:$0xff]  ;;  %v764_v41 = vld [vmem:[#allocation5 + $0x170] sm:$0xff] }
  0x86   : > { %864 = vmatprep.subr.mxu0 %v731_v43  ;;  %941 = vmatprep.subr.mxu1 %v795_v44  ;;  %v828_v42 = vld [vmem:[#allocation5 + $0x370] sm:$0xff]  ;;  %v763_v43 = vld [vmem:[#allocation5 + $0x168] sm:$0xff] }
  0x87   : > { %865 = vmatpush1.msra.mxu0 %v730_v45  ;;  %942 = vmatpush1.msra.mxu1 %v794_v46  ;;  %v827_v44 = vld [vmem:[#allocation5 + $0x368] sm:$0xff]  ;;  %v762_v45 = vld [vmem:[#allocation5 + $0x160] sm:$0xff] }
  0x88   : > { %866 = vmatprep.subr.mxu0 %v729_v47  ;;  %943 = vmatprep.subr.mxu1 %v793_v48  ;;  %v826_v46 = vld [vmem:[#allocation5 + $0x360] sm:$0xff]  ;;  %v761_v47 = vld [vmem:[#allocation5 + $0x158] sm:$0xff] }
  0x89   : > { %867 = vmatpush1.msra.mxu0 %v728_v49  ;;  %944 = vmatpush1.msra.mxu1 %v792_v50  ;;  %v825_v48 = vld [vmem:[#allocation5 + $0x358] sm:$0xff]  ;;  %v760_v49 = vld [vmem:[#allocation5 + $0x150] sm:$0xff] }
  0x8a   : > { %868 = vmatprep.subr.mxu0 %v727_v51  ;;  %945 = vmatprep.subr.mxu1 %v791_v52  ;;  %v824_v50 = vld [vmem:[#allocation5 + $0x350] sm:$0xff]  ;;  %v759_v51 = vld [vmem:[#allocation5 + $0x148] sm:$0xff] }
  0x8b   : > { %869 = vmatpush1.msra.mxu0 %v726_v55  ;;  %946 = vmatpush1.msra.mxu1 %v790_v56  ;;  %v823_v52 = vld [vmem:[#allocation5 + $0x348] sm:$0xff]  ;;  %v758_v55 = vld [vmem:[#allocation5 + $0x140] sm:$0xff] }
  0x8c   : > { %870 = vmatprep.subr.mxu0 %v725_v57  ;;  %947 = vmatprep.subr.mxu1 %v789_v58  ;;  %v822_v56 = vld [vmem:[#allocation5 + $0x340] sm:$0xff]  ;;  %v757_v57 = vld [vmem:[#allocation5 + $0x138] sm:$0xff] }
  0x8d   : > { %871 = vmatpush1.msra.mxu0 %v724_v59  ;;  %948 = vmatpush1.msra.mxu1 %v788_v60  ;;  %v821_v58 = vld [vmem:[#allocation5 + $0x338] sm:$0xff]  ;;  %v756_v59 = vld [vmem:[#allocation5 + $0x130] sm:$0xff] }
  0x8e   : > { %872 = vmatprep.subr.mxu0 %v723_v61  ;;  %949 = vmatprep.subr.mxu1 %v787_v63  ;;  %v820_v60 = vld [vmem:[#allocation5 + $0x330] sm:$0xff]  ;;  %v755_v61 = vld [vmem:[#allocation5 + $0x128] sm:$0xff] }
  0x8f   : > { %873 = vmatpush1.msra.mxu0 %v722_v1  ;;  %950 = vmatpush1.msra.mxu1 %v786_v2  ;;  %v819_v63 = vld [vmem:[#allocation5 + $0x328] sm:$0xff]  ;;  %v754_v1 = vld [vmem:[#allocation5 + $0x120] sm:$0xff] }
  0x90   : > { %874 = vmatprep.subr.mxu0 %v721_v3  ;;  %951 = vmatprep.subr.mxu1 %v785_v4  ;;  %v818_v2 = vld [vmem:[#allocation5 + $0x320] sm:$0xff]  ;;  %v753_v3 = vld [vmem:[#allocation5 + $0x118] sm:$0xff] }
  0x91   : > { %875 = vmatpush1.msra.mxu0 %v720_v5  ;;  %952 = vmatpush1.msra.mxu1 %v784_v6  ;;  %v817_v4 = vld [vmem:[#allocation5 + $0x318] sm:$0xff]  ;;  %v752_v5 = vld [vmem:[#allocation5 + $0x110] sm:$0xff] }
  0x92   : > { %876 = vmatprep.subr.mxu0 %v719_v7  ;;  %953 = vmatprep.subr.mxu1 %v783_v8  ;;  %v816_v6 = vld [vmem:[#allocation5 + $0x310] sm:$0xff]  ;;  %v751_v7 = vld [vmem:[#allocation5 + $0x108] sm:$0xff] }
  0x93   : > { %877 = vmatpush1.msra.mxu0 %v718_v9  ;;  %954 = vmatpush1.msra.mxu1 %v782_v10  ;;  %v815_v8 = vld [vmem:[#allocation5 + $0x308] sm:$0xff]  ;;  %v750_v9 = vld [vmem:[#allocation5 + $0x100] sm:$0xff] }
  0x94   : > { %878 = vmatprep.subr.mxu0 %v781_v62  ;;  %955 = vmatprep.subr.mxu1 %v845_v11  ;;  %v814_v10 = vld [vmem:[#allocation5 + $0x300] sm:$0xff] }
  0x95   : > { %879 = vmatpush2.msra.mxu0 %v780_v12  ;;  %956 = vmatpush2.msra.mxu1 %v844_v13 }
  0x96   : > { %880 = vmatprep.subr.mxu0 %v779_v14  ;;  %957 = vmatprep.subr.mxu1 %v843_v15 }
  0x97   : > { %881 = vmatpush2.msra.mxu0 %v778_v16  ;;  %958 = vmatpush2.msra.mxu1 %v842_v53 }
  0x98   : > { %882 = vmatprep.subr.mxu0 %v777_v17  ;;  %959 = vmatprep.subr.mxu1 %v841_v0 }
  0x99   : > { %883 = vmatpush2.msra.mxu0 %v776_v18  ;;  %960 = vmatpush2.msra.mxu1 %v840_v54 }
  0x9a   : > { %884 = vmatprep.subr.mxu0 %v775_v19  ;;  %961 = vmatprep.subr.mxu1 %v839_v20 }
  0x9b   : > { %885 = vmatpush2.msra.mxu0 %v774_v21  ;;  %962 = vmatpush2.msra.mxu1 %v838_v22 }
  0x9c   : > { %886 = vmatprep.subr.mxu0 %v773_v23  ;;  %963 = vmatprep.subr.mxu1 %v837_v24 }
  0x9d   : > { %887 = vmatpush2.msra.mxu0 %v772_v25  ;;  %964 = vmatpush2.msra.mxu1 %v836_v26 }
  0x9e   : > { %888 = vmatprep.subr.mxu0 %v771_v27  ;;  %965 = vmatprep.subr.mxu1 %v835_v28 }
  0x9f   : > { %889 = vmatpush2.msra.mxu0 %v770_v29  ;;  %966 = vmatpush2.msra.mxu1 %v834_v30 }
  0xa0   : > { %890 = vmatprep.subr.mxu0 %v769_v31  ;;  %967 = vmatprep.subr.mxu1 %v833_v32 }
  0xa1   : > { %891 = vmatpush2.msra.mxu0 %v768_v33  ;;  %968 = vmatpush2.msra.mxu1 %v832_v34 }
  0xa2   : > { %892 = vmatprep.subr.mxu0 %v767_v35  ;;  %969 = vmatprep.subr.mxu1 %v831_v36 }
  0xa3   : > { %893 = vmatpush2.msra.mxu0 %v766_v37  ;;  %970 = vmatpush2.msra.mxu1 %v830_v38 }
  0xa4   : > { %894 = vmatprep.subr.mxu0 %v765_v39  ;;  %971 = vmatprep.subr.mxu1 %v829_v40 }
  0xa5   : > { %895 = vmatpush2.msra.mxu0 %v764_v41  ;;  %972 = vmatpush2.msra.mxu1 %v828_v42 }
  0xa6   : > { %896 = vmatprep.subr.mxu0 %v763_v43  ;;  %973 = vmatprep.subr.mxu1 %v827_v44 }
  0xa7   : > { %897 = vmatpush2.msra.mxu0 %v762_v45  ;;  %974 = vmatpush2.msra.mxu1 %v826_v46 }
  0xa8   : > { %898 = vmatprep.subr.mxu0 %v761_v47  ;;  %975 = vmatprep.subr.mxu1 %v825_v48 }
  0xa9   : > { %899 = vmatpush2.msra.mxu0 %v760_v49  ;;  %976 = vmatpush2.msra.mxu1 %v824_v50 }
  0xaa   : > { %900 = vmatprep.subr.mxu0 %v759_v51  ;;  %977 = vmatprep.subr.mxu1 %v823_v52 }
  0xab   : > { %901 = vmatpush2.msra.mxu0 %v758_v55  ;;  %978 = vmatpush2.msra.mxu1 %v822_v56 }
  0xac   : > { %902 = vmatprep.subr.mxu0 %v757_v57  ;;  %979 = vmatprep.subr.mxu1 %v821_v58 }
  0xad   : > { %903 = vmatpush2.msra.mxu0 %v756_v59  ;;  %980 = vmatpush2.msra.mxu1 %v820_v60 }
  0xae   : > { %904 = vmatprep.subr.mxu0 %v755_v61  ;;  %981 = vmatprep.subr.mxu1 %v819_v63 }
  0xaf   : > { %905 = vmatpush2.msra.mxu0 %v754_v1  ;;  %982 = vmatpush2.msra.mxu1 %v818_v2 }
  0xb0   : > { %906 = vmatprep.subr.mxu0 %v753_v3  ;;  %983 = vmatprep.subr.mxu1 %v817_v4 }
  0xb1   : > { %907 = vmatpush2.msra.mxu0 %v752_v5  ;;  %984 = vmatpush2.msra.mxu1 %v816_v6 }
  0xb2   : > { %908 = vmatprep.subr.mxu0 %v751_v7  ;;  %985 = vmatprep.subr.mxu1 %v815_v8 }
  0xb3   : > { %909 = vmatpush2.msra.mxu0 %v750_v9  ;;  %986 = vmatpush2.msra.mxu1 %v814_v10 }
 0x10d   : > { %v432_v62 = vpop.f32.mrf.mxu0  ;;  %v509_v11 = vpop.f32.mrf.mxu1 }
 0x10f   : > { %v434_v12 = vpop.f32.mrf.mxu0  ;;  %v511_v13 = vpop.f32.mrf.mxu1 }
 0x129   : > { %v438_v14 = vpop.f32.mrf.mxu0  ;;  %v515_v15 = vpop.f32.mrf.mxu1 }
 0x12b   : > { %v440_v16 = vpop.f32.mrf.mxu0  ;;  %v517_v53 = vpop.f32.mrf.mxu1 }
 0x131   : > { %v586_v17 = vpop.f32.mrf.mxu0  ;;  %v663_v0 = vpop.f32.mrf.mxu1 }
 0x132   : > { %v587_v18 = vadd.f32 %v586_v17, %v432_v62  ;;  %v664_v54 = vadd.f32 %v663_v0, %v509_v11 }
 0x133   : > { %v588_v19 = vpop.f32.mrf.mxu0  ;;  %v665_v20 = vpop.f32.mrf.mxu1 }
 0x134   : > { %v674_v21 = vmul.f32 %v587_v18, %v587_v18  ;;  %v678_v22 = vmul.f32 %v664_v54, %v664_v54  ;;  %v589_v23 = vadd.f32 %v588_v19, %v434_v12  ;;  %v666_v24 = vadd.f32 %v665_v20, %v511_v13 }
 0x135   : > { %v592_v25 = vpop.f32.mrf.mxu0  ;;  %v669_v26 = vpop.f32.mrf.mxu1 }
 0x136   : > { %v682_v27 = vadd.f32 %v678_v22, %v674_v21  ;;  %v675_v28 = vmul.f32 %v589_v23, %v589_v23  ;;  %v679_v29 = vmul.f32 %v666_v24, %v666_v24  ;;  %v593_v30 = vadd.f32 %v592_v25, %v438_v14 }
 0x137   : > { %v670_v31 = vadd.f32 %v669_v26, %v515_v15  ;;  %v594_v32 = vpop.f32.mrf.mxu0  ;;  %v671_v33 = vpop.f32.mrf.mxu1  ;;  %v1018_v25 = vstv %s1017_s12  ;;  %v1015_v26 = vld [vmem:[%s1378_s3] sm:$0xff] }
 0x138   : > { %vm686_vm1 = vcmp.gt.f32.partialorder %v682_v27, 0.0  ;;  %v683_v34 = vadd.f32 %v679_v29, %v675_v28  ;;  %v676_v35 = vmul.f32 %v593_v30, %v593_v30  ;;  %v595_v36 = vadd.f32 %v594_v32, %v440_v16 }
 0x139   : > { %v690_v37 = vsel %vm686_vm1, %v682_v27, 1.0  ;;  %v680_v38 = vmul.f32 %v670_v31, %v670_v31  ;;  %v672_v39 = vadd.f32 %v671_v33, %v517_v53  ;;  %v1003_v53 = vld [vmem:[#allocation2 + $0x8] sm:$0x1]  ;;  %vm1019_vm5 = vcmp.eq.s32.totalorder %v1018_v25, 1 }
 0x13a   : > { %1156 = vrsqrt.f32 %v690_v37  ;;  %vm687_vm2 = vcmp.gt.f32.partialorder %v683_v34, 0.0  ;;  %v677_v40 = vmul.f32 %v595_v36, %v595_v36  ;;  %v1020_v28 = vsel %vm1019_vm5, %v1015_v26, 1.0 }
 0x13b   : > { %v691_v41 = vsel %vm687_vm2, %v683_v34, 1.0  ;;  %v684_v42 = vadd.f32 %v680_v38, %v676_v35  ;;  %v681_v43 = vmul.f32 %v672_v39, %v672_v39 }
 0x13c   : > { %1158 = vrsqrt.f32 %v691_v41 }
 0x13d   : > { %vm688_vm3 = vcmp.gt.f32.partialorder %v684_v42, 0.0  ;;  %v685_v44 = vadd.f32 %v681_v43, %v677_v40 }
 0x13e   : > { %v692_v45 = vsel %vm688_vm3, %v684_v42, 1.0 }
 0x13f   : > { %1160 = vrsqrt.f32 %v692_v45  ;;  %vm689_vm4 = vcmp.gt.f32.partialorder %v685_v44, 0.0 }
 0x140   : > { %v693_v46 = vsel %vm689_vm4, %v685_v44, 1.0 }
 0x141   : > { %1162 = vrsqrt.f32 %v693_v46 }
 0x147   : > { %v1157_v47 = vpop.eup %1156 }
 0x148   : > { %v698_v48 = vmul.f32 %v1157_v47, %v682_v27  ;;  %v1016_v27 = vld [vmem:[%s1378_s3 + $0x8] sm:$0x3] }
 0x149   : > { %v1159_v49 = vpop.eup %1158  ;;  %v1021_v29 = vsel %vm1019_vm5, %v1016_v27, 1.0 }
 0x14a   : > { %v702_v50 = vmul.f32 %v1157_v47, %v698_v48  ;;  %v699_v51 = vmul.f32 %v1159_v49, %v683_v34 }
 0x14c   : > { %v1161_v52 = vpop.eup %1160  ;;  %v703_v55 = vmul.f32 %v1159_v49, %v699_v51  ;;  %v706_v56 = vsel %vm686_vm1, %v702_v50, 1.0 }
 0x14d   : > { %v700_v57 = vmul.f32 %v1161_v52, %v684_v42  ;;  %v710_v2 = vmul.f32 %v706_v56, %v587_v18  ;;  %v712_v3 = vmul.f32 %v706_v56, %v664_v54  ;;  %v1009_v54 = vld [vmem:[#allocation2 + $0x9] sm:$0x1] }
 0x14e   : > { %v1163_v58 = vpop.eup %1162  ;;  %v707_v59 = vsel %vm687_vm2, %v703_v55, 1.0 }
 0x14f   : > { %v713_v60 = vmul.f32 %v707_v59, %v666_v24  ;;  %v704_v61 = vmul.f32 %v1161_v52, %v700_v57  ;;  %v701_v63 = vmul.f32 %v1163_v58, %v685_v44  ;;  %v711_v1 = vmul.f32 %v707_v59, %v589_v23 }
 0x151   : > { %v705_v4 = vmul.f32 %v1163_v58, %v701_v63  ;;  %910 = vmatprep.mubr.f32.mxu0 %v711_v1  ;;  %987 = vmatprep.mubr.f32.mxu1 %v713_v60  ;;  %v708_v5 = vsel %vm688_vm3, %v704_v61, 1.0 }
 0x152   : > { %911 = vmatmul.mubr.f32.vlgmr.msra.gmra.mxu0 %v710_v2  ;;  %988 = vmatmul.mubr.f32.vlgmr.msra.gmra.mxu1 %v712_v3  ;;  %v716_v9 = vmul.f32 %v708_v5, %v670_v31  ;;  %v714_v10 = vmul.f32 %v708_v5, %v593_v30 }
 0x153   : > { %v709_v6 = vsel %vm689_vm4, %v705_v4, 1.0 }
 0x154   : > { %v717_v7 = vmul.f32 %v709_v6, %v672_v39  ;;  %v715_v8 = vmul.f32 %v709_v6, %v595_v36 }
 0x156   : > { %916 = vmatprep.mubr.f32.mxu0 %v715_v8  ;;  %993 = vmatprep.mubr.f32.mxu1 %v717_v7 }
 0x157   : > { %917 = vmatmul.mubr.f32.gmra.mxu0 %v714_v10  ;;  %994 = vmatmul.mubr.f32.gmra.mxu1 %v716_v9 }
 0x212   : > { %v912_v62 = vpop.f32.mrf.mxu0  ;;  %v989_v11 = vpop.f32.mrf.mxu1 }
 0x213   : > { %v990_v12 = vadd.f32 %v989_v11, %v912_v62 }
 0x214   : > { %v914_v13 = vpop.f32.mrf.mxu0  ;;  %v991_v14 = vpop.f32.mrf.mxu1 }
 0x215   : > { %1006 = vst [vmem:[#allocation2] sm:$0xff] %v990_v12  ;;  %v992_v22 = vadd.f32 %v991_v14, %v914_v13 }
 0x217   : > { %v918_v15 = vpop.f32.mrf.mxu0  ;;  %v995_v16 = vpop.f32.mrf.mxu1 }
 0x218   : > { %v996_v17 = vadd.f32 %v995_v16, %v918_v15 }
 0x219   : > { %v920_v0 = vpop.f32.mrf.mxu0  ;;  %v997_v18 = vpop.f32.mrf.mxu1 }
 0x21a   : > { %v1005_v19 = vadd.f32 %v1003_v53, %v996_v17  ;;  %v998_v20 = vadd.f32 %v997_v18, %v920_v0 }
 0x21c   : > { %1007 = vst [vmem:[#allocation2 + $0x8] sm:$0x1] %v1005_v19  ;;  %v1011_v21 = vadd.f32 %v1009_v54, %v998_v20 }
 0x21e   : > { %1013 = vst [vmem:[#allocation2 + $0x9] sm:$0x1] %v1011_v21 }
 0x223   : > { %v1008_v23 = vld [vmem:[#allocation2 + $0x1] sm:$0xff] }
 0x224   : > { %v1010_v24 = vadd.f32 %v1008_v23, %v992_v22 }
 0x226   : > { %1012 = vst [vmem:[#allocation2 + $0x1] sm:$0xff] %v1010_v24 }
 0x22d   : > { %v1022_v30 = vld [vmem:[#allocation2] sm:$0xff]  ;;  %v1023_v31 = vld [vmem:[#allocation2 + $0x8] sm:$0x3] }
 0x22e   : > { %v1024_v32 = vmul.f32 %v1022_v30, %v1020_v28  ;;  %v1025_v33 = vmul.f32 %v1023_v31, %v1021_v29 }
 0x230   : > { %1026 = vst [vmem:[%s227_s20] sm:$0xff] %v1024_v32  ;;  %1027 = vst [vmem:[%s227_s20 + $0x8] sm:$0x3] %v1025_v33 }
 0x231 PF: > { %s16_s15 = sadd.s32 1, %s1230_s15  }
 0x232   : > { %p13_p3 = scmp.ge.s32.totalorder %s16_s15, 4  }
 0x234   :  { %15 = sbr.rel (!%p13_p3) target bundleno = 2 (0x2), region = 75 }
 0x239   :  { %1049 = vsyncpa [#allocation4], 1 }
 0x23a   :  { %1051 = vsyncpa [#allocation4 + $0x1], 1 }
 0x23b   :  { %1052 = vsyncpa [#allocation6], 1 }

</bundles_post_ra>
